<compile_context>
chip_gen: v5e
topology: v5e:2x2
jax: 0.10.0
libtpu: 0.0.40
codegen_flags: <defaults>
</compile_context>

<pallas_src>
import functools
import math

import jax
import jax.numpy as jnp
from jax.experimental import pallas as pl
from jax.experimental.pallas import tpu as pltpu


def _round_up(x, m):
    return ((x + m - 1) // m) * m


def _encoder_kernel(num_layers, mxu_dtype, *refs):
    """Fused MLP kernel.

    refs = (x_ref, w1_ref, b1_ref, ..., wN_ref, bN_ref, o_ref)
    w_ref: (d_in, d_out) in mxu_dtype; b_ref: (1, d_out) float32.
    ReLU after every layer except the last (matches Encoder.forward).
    """
    x_ref = refs[0]
    o_ref = refs[-1]
    param_refs = refs[1:-1]

    h = x_ref[...]  # (tile, d_in); already mxu_dtype for layer 0
    for layer in range(num_layers):
        w_ref = param_refs[2 * layer]
        b_ref = param_refs[2 * layer + 1]
        # MXU matmul with mxu_dtype operands and f32 accumulation.
        acc = jnp.dot(h.astype(mxu_dtype), w_ref[...],
                      preferred_element_type=jnp.float32)
        acc = acc + b_ref[...]            # bias add in f32
        if layer != num_layers - 1:
            acc = jnp.maximum(acc, 0.0)   # ReLU in f32
        h = acc
    o_ref[...] = h.astype(o_ref.dtype)


# Index map for operands whose block never changes across the grid
# (weights/biases): same block index every step => Pallas skips re-DMA.
def _const_idx(i):
    return (0, 0)


def encoder_forward(x, weights_t, biases, *, batch_tile=512,
                    mxu_dtype=jnp.bfloat16):
    """Run the fused Encoder MLP as a single Pallas kernel.

    x:         (B, input_dim) array
    weights_t: list of (d_in, d_out) arrays (PyTorch W transposed)
    biases:    list of (d_out,) arrays
    """
    assert len(weights_t) == len(biases)
    num_layers = len(weights_t)
    B, in_dim = x.shape
    out_dim = weights_t[-1].shape[1]
    out_dtype = x.dtype

    # Sublane granularity for the batch tile: 8 rows for f32, 16 for bf16.
    gran = 8 * (4 // jnp.dtype(mxu_dtype).itemsize)
    # Cap the tile so the batch grid has >= 2 steps when possible (keeps both
    # v7x TensorCores busy under dimension_semantics=("parallel",)); large
    # batches use full batch_tile rows per step.
    tile = max(gran, min(batch_tile, _round_up(pl.cdiv(B, 2), gran)))
    b_pad = _round_up(B, tile)

    x_p = x
    if b_pad != B:
        x_p = jnp.pad(x, ((0, b_pad - B), (0, 0)))
    # Feed the MXU dtype straight from HBM (halves x read traffic vs f32).
    x_p = x_p.astype(mxu_dtype)
    w_cast = [w.astype(mxu_dtype) for w in weights_t]
    # Biases as (1, d_out) f32 rows so bias-add / ReLU stay in f32.
    b_2d = [b.astype(jnp.float32).reshape(1, -1) for b in biases]

    grid = (b_pad // tile,)
    kernel = functools.partial(_encoder_kernel, num_layers, mxu_dtype)

    flat_args = [x_p]
    in_specs = [pl.BlockSpec((tile, in_dim), lambda i: (i, 0))]
    for w, b in zip(w_cast, b_2d):
        flat_args.append(w)
        flat_args.append(b)
        in_specs.append(pl.BlockSpec(w.shape, _const_idx))
        in_specs.append(pl.BlockSpec(b.shape, _const_idx))
    out_specs = pl.BlockSpec((tile, out_dim), lambda i: (i, 0))

    out = pl.pallas_call(
        kernel,
        out_shape=jax.ShapeDtypeStruct((b_pad, out_dim), out_dtype),
        grid_spec=pltpu.PrefetchScalarGridSpec(
            num_scalar_prefetch=0,
            grid=grid,
            in_specs=in_specs,
            out_specs=out_specs,
        ),
        compiler_params=pltpu.CompilerParams(
            dimension_semantics=("parallel",),
        ),
    )(*flat_args)

    return out[:B] if b_pad != B else out


def init_encoder_params(key, input_dim, hidden_dims, output_dim):
    """Deterministic init matching nn.Linear's default U(-1/sqrt(in), 1/sqrt(in))."""
    dims = [input_dim] + list(hidden_dims) + [output_dim]
    weights_t, biases = [], []
    for ii in range(1, len(dims)):
        d_in, d_out = dims[ii - 1], dims[ii]
        bound = 1.0 / math.sqrt(d_in)
        key, kw, kb = jax.random.split(key, 3)
        # PyTorch stores W as (out, in); we keep it transposed: (in, out).
        w_t = jax.random.uniform(kw, (d_in, d_out), jnp.float32, -bound, bound)
        b = jax.random.uniform(kb, (d_out,), jnp.float32, -bound, bound)
        weights_t.append(w_t)
        biases.append(b)
    return weights_t, biases


def encoder_reference(x, weights_t, biases):
    """Pure-JAX f32 reference mirroring Encoder.forward."""
    h = x
    n = len(weights_t)
    for ii in range(n - 1):
        h = h @ weights_t[ii] + biases[ii]
        h = jnp.maximum(h, 0.0)
    h = h @ weights_t[-1] + biases[-1]
    return h


if __name__ == "__main__":
    # Shapes consistent with the module: Encoder(input_dim=16,
    # hidden_dims=[32, 64], output_dim=8).  batch=50 exercises both the
    # multi-step batch grid and the tail-padding path.
    input_dim, hidden_dims, output_dim = 16, [32, 64], 8
    batch = 50

    key = jax.random.PRNGKey(0)
    key, kx = jax.random.split(key)
    x = jax.random.normal(kx, (batch, input_dim), jnp.float32)

    weights_t, biases = init_encoder_params(key, input_dim, hidden_dims, output_dim)

    ref = encoder_reference(x, weights_t, biases)

    # Exact-path check (f32 MXU operands).
    out_f32 = jax.block_until_ready(
        encoder_forward(x, weights_t, biases, mxu_dtype=jnp.float32))
    assert out_f32.shape == (batch, output_dim)
    assert jnp.allclose(out_f32, ref, atol=1e-5, rtol=1e-5), "f32 mismatch vs reference"

    # Fast-path check (bf16 MXU operands, f32 accumulation).
    out_bf16 = jax.block_until_ready(encoder_forward(x, weights_t, biases))
    assert out_bf16.shape == (batch, output_dim)
    assert jnp.allclose(out_bf16, ref, atol=5e-2, rtol=5e-2), "bf16 mismatch vs reference"

    print("KERNEL_OK")
</pallas_src>

<mosaic_0001>
module attributes {stable_mosaic.version = 11 : i64} {
  func.func @_encoder_kernel(%arg0: i32, %arg1: memref<32x16xf32, #tpu.memory_space<vmem>>, %arg2: memref<16x32xf32, #tpu.memory_space<vmem>>, %arg3: memref<1x32xf32, #tpu.memory_space<vmem>>, %arg4: memref<32x64xf32, #tpu.memory_space<vmem>>, %arg5: memref<1x64xf32, #tpu.memory_space<vmem>>, %arg6: memref<64x8xf32, #tpu.memory_space<vmem>>, %arg7: memref<1x8xf32, #tpu.memory_space<vmem>>, %arg8: memref<32x8xf32, #tpu.memory_space<vmem>>) attributes {dimension_semantics = [#tpu.dimension_semantics<parallel>], iteration_bounds = array<i64: 2>, scalar_prefetch = 0 : i64, scratch_operands = 0 : i64, tpu.core_type = #tpu.core_type<tc>, window_params = [{transform_indices = @transform_0, window_bounds = array<i64: 32, 16>}, {pipeline_mode = #tpu.pipeline_mode<synchronous>, transform_indices = @transform_1, window_bounds = array<i64: 16, 32>}, {pipeline_mode = #tpu.pipeline_mode<synchronous>, transform_indices = @transform_2, window_bounds = array<i64: 1, 32>}, {pipeline_mode = #tpu.pipeline_mode<synchronous>, transform_indices = @transform_3, window_bounds = array<i64: 32, 64>}, {pipeline_mode = #tpu.pipeline_mode<synchronous>, transform_indices = @transform_4, window_bounds = array<i64: 1, 64>}, {pipeline_mode = #tpu.pipeline_mode<synchronous>, transform_indices = @transform_5, window_bounds = array<i64: 64, 8>}, {pipeline_mode = #tpu.pipeline_mode<synchronous>, transform_indices = @transform_6, window_bounds = array<i64: 1, 8>}, {transform_indices = @transform_7, window_bounds = array<i64: 32, 8>}]} {
    %c0 = arith.constant 0 : index
    %c0_0 = arith.constant 0 : index
    %0 = vector.load %arg1[%c0, %c0_0] : memref<32x16xf32, #tpu.memory_space<vmem>>, vector<32x16xf32>
    %c0_1 = arith.constant 0 : index
    %c0_2 = arith.constant 0 : index
    %1 = vector.load %arg2[%c0_1, %c0_2] : memref<16x32xf32, #tpu.memory_space<vmem>>, vector<16x32xf32>
    %cst = arith.constant dense<0.000000e+00> : vector<32x32xf32>
    %2 = tpu.matmul %0, %1, %cst {dimension_numbers = #tpu.dot_dimension_numbers<[1], [0], [0], [1], [0, 0, 1, 1], [], []>} : vector<32x16xf32>, vector<16x32xf32>, vector<32x32xf32> -> vector<32x32xf32>
    %c0_3 = arith.constant 0 : index
    %c0_4 = arith.constant 0 : index
    %3 = vector.load %arg3[%c0_3, %c0_4] : memref<1x32xf32, #tpu.memory_space<vmem>>, vector<1x32xf32>
    %4 = vector.broadcast %3 : vector<1x32xf32> to vector<32x32xf32>
    %5 = arith.addf %2, %4 : vector<32x32xf32>
    %cst_5 = arith.constant 0.000000e+00 : f32
    %6 = vector.broadcast %cst_5 : f32 to vector<32x32xf32>
    %7 = arith.maximumf %5, %6 : vector<32x32xf32>
    %c0_6 = arith.constant 0 : index
    %c0_7 = arith.constant 0 : index
    %8 = vector.load %arg4[%c0_6, %c0_7] : memref<32x64xf32, #tpu.memory_space<vmem>>, vector<32x64xf32>
    %cst_8 = arith.constant dense<0.000000e+00> : vector<32x64xf32>
    %9 = tpu.matmul %7, %8, %cst_8 {dimension_numbers = #tpu.dot_dimension_numbers<[1], [0], [0], [1], [0, 0, 1, 1], [], []>} : vector<32x32xf32>, vector<32x64xf32>, vector<32x64xf32> -> vector<32x64xf32>
    %c0_9 = arith.constant 0 : index
    %c0_10 = arith.constant 0 : index
    %10 = vector.load %arg5[%c0_9, %c0_10] : memref<1x64xf32, #tpu.memory_space<vmem>>, vector<1x64xf32>
    %11 = vector.broadcast %10 : vector<1x64xf32> to vector<32x64xf32>
    %12 = arith.addf %9, %11 : vector<32x64xf32>
    %cst_11 = arith.constant 0.000000e+00 : f32
    %13 = vector.broadcast %cst_11 : f32 to vector<32x64xf32>
    %14 = arith.maximumf %12, %13 : vector<32x64xf32>
    %c0_12 = arith.constant 0 : index
    %c0_13 = arith.constant 0 : index
    %15 = vector.load %arg6[%c0_12, %c0_13] : memref<64x8xf32, #tpu.memory_space<vmem>>, vector<64x8xf32>
    %cst_14 = arith.constant dense<0.000000e+00> : vector<32x8xf32>
    %16 = tpu.matmul %14, %15, %cst_14 {dimension_numbers = #tpu.dot_dimension_numbers<[1], [0], [0], [1], [0, 0, 1, 1], [], []>} : vector<32x64xf32>, vector<64x8xf32>, vector<32x8xf32> -> vector<32x8xf32>
    %c0_15 = arith.constant 0 : index
    %c0_16 = arith.constant 0 : index
    %17 = vector.load %arg7[%c0_15, %c0_16] : memref<1x8xf32, #tpu.memory_space<vmem>>, vector<1x8xf32>
    %18 = vector.broadcast %17 : vector<1x8xf32> to vector<32x8xf32>
    %19 = arith.addf %16, %18 : vector<32x8xf32>
    %c0_17 = arith.constant 0 : index
    %c0_18 = arith.constant 0 : index
    %20 = vector.load %arg8[%c0_17, %c0_18] : memref<32x8xf32, #tpu.memory_space<vmem>>, vector<32x8xf32>
    tpu.vector_store %arg8[%c0_17, %c0_18], %19 {strides = array<i32>} : memref<32x8xf32, #tpu.memory_space<vmem>>, vector<32x8xf32>,
    return
  }
  func.func @transform_0(%arg0: i32) -> (i32, i32) {
    %c0_i32 = arith.constant 0 : i32
    %c0_i32_0 = arith.constant 0 : i32
    return %arg0, %c0_i32 : i32, i32
  }
  func.func @transform_1(%arg0: i32) -> (i32, i32) {
    %c0_i32 = arith.constant 0 : i32
    %c0_i32_0 = arith.constant 0 : i32
    %c0_i32_1 = arith.constant 0 : i32
    return %c0_i32, %c0_i32_0 : i32, i32
  }
  func.func @transform_2(%arg0: i32) -> (i32, i32) {
    %c0_i32 = arith.constant 0 : i32
    %c0_i32_0 = arith.constant 0 : i32
    %c0_i32_1 = arith.constant 0 : i32
    return %c0_i32, %c0_i32_0 : i32, i32
  }
  func.func @transform_3(%arg0: i32) -> (i32, i32) {
    %c0_i32 = arith.constant 0 : i32
    %c0_i32_0 = arith.constant 0 : i32
    %c0_i32_1 = arith.constant 0 : i32
    return %c0_i32, %c0_i32_0 : i32, i32
  }
  func.func @transform_4(%arg0: i32) -> (i32, i32) {
    %c0_i32 = arith.constant 0 : i32
    %c0_i32_0 = arith.constant 0 : i32
    %c0_i32_1 = arith.constant 0 : i32
    return %c0_i32, %c0_i32_0 : i32, i32
  }
  func.func @transform_5(%arg0: i32) -> (i32, i32) {
    %c0_i32 = arith.constant 0 : i32
    %c0_i32_0 = arith.constant 0 : i32
    %c0_i32_1 = arith.constant 0 : i32
    return %c0_i32, %c0_i32_0 : i32, i32
  }
  func.func @transform_6(%arg0: i32) -> (i32, i32) {
    %c0_i32 = arith.constant 0 : i32
    %c0_i32_0 = arith.constant 0 : i32
    %c0_i32_1 = arith.constant 0 : i32
    return %c0_i32, %c0_i32_0 : i32, i32
  }
  func.func @transform_7(%arg0: i32) -> (i32, i32) {
    %c0_i32 = arith.constant 0 : i32
    %c0_i32_0 = arith.constant 0 : i32
    return %arg0, %c0_i32 : i32, i32
  }
}

</mosaic_0001>

<bundles_post_ra>
// kernel: tpu_custom_call.1
= control target key start
LH: loop header
LB: loop body
LE: loop exit
PB: predicated region body
PF: predicated region fallthrough
CT: control target
= control target key end

     0   :  { %s597_s24 = smov 0   ;;  %s676_s0 = inlined_call_operand.vmem [shape: f32[64,16], index: 0, kind: input, shape index: {}]   ;;  %s677_s1 = inlined_call_operand.vmem [shape: f32[16,32], index: 1, kind: input, shape index: {}]   ;;  %s678_s2 = inlined_call_operand.vmem [shape: f32[1,32], index: 2, kind: input, shape index: {}]   ;;  %s679_s3 = inlined_call_operand.vmem [shape: f32[32,64], index: 3, kind: input, shape index: {}]   ;;  %s680_s4 = inlined_call_operand.vmem [shape: f32[1,64], index: 4, kind: input, shape index: {}]   ;;  %s681_s5 = inlined_call_operand.vmem [shape: f32[64,8], index: 5, kind: input, shape index: {}]   ;;  %s682_s6 = inlined_call_operand.vmem [shape: f32[1,8], index: 6, kind: input, shape index: {}]   ;;  %s683_s7 = inlined_call_operand.vmem [shape: f32[64,8], index: 7, kind: output, shape index: {}]  }
   0x1 LB: > { %s507_s25 = sadd.s32 4294967295, %s555_s24   ;;  %p511_p0 = scmp.ge.s32.totalorder %s555_s24, 1  ;;  %s555_s24 = sphi %s597_s24, %s17_s24  }
   0x2   : > { %p238_p1 = scmp.lt.s32.totalorder %s555_s24, 3 }
   0x4   : > { %p239_p2 = pnand %p511_p0, %p238_p1 }
   0x5   : > { %s512_s30 = sshll.u32 (!%p239_p2), %s507_s25, 2 }
   0x6   : > { %242 = sbr.rel (%p239_p2) target bundleno = 434 (0x1b2), region = 48  ;;  %p271_p3 = scmp.lt.s32.totalorder (!%p239_p2), %s512_s30, 7 }
   0xb   : > { %v287_v0 = vld [vmem:[%s677_s1 + $0x8] sm:$0xff]  ;;  %v286_v1 = vld [vmem:[%s677_s1] sm:$0xff]  ;;  %v341_v2 = vld [vmem:[%s679_s3 + $0x18] sm:$0xff]  ;;  %s685_s30 = smov (!%p271_p3, %s512_s30), 7  ;;  %vm292_vm0 = vcmask 130048   ;;  %vm346_vm1 = vcmask 261120  }
   0xc   : > { %319 = vmatpush.msra.mxu0 %v287_v0  ;;  %371 = vmatpush.msra.mxu1 %v341_v2  ;;  %s513_s10 = sshll.u32 %s685_s30, 3  ;;  %v340_v7 = vld [vmem:[%s679_s3 + $0x10] sm:$0xff]  ;;  %v339_v8 = vld [vmem:[%s679_s3 + $0x8] sm:$0xff]  ;;  %v338_v9 = vld [vmem:[%s679_s3] sm:$0xff]  ;;  %vm404_vm2 = vcmask 523264   ;;  %vm446_vm3 = vcmask 64512  }
   0xd   : > { %s274_s13 = scalar_lea.vmem %s676_s0, %s513_s10  ;;  %v546_v10 = vld [vmem:[%s678_s2] ss:$0 sm:$0xff]  ;;  %v399_v11 = vld [vmem:[%s681_s5 + $0x38] sm:$0xff]  ;;  %v398_v12 = vld [vmem:[%s681_s5 + $0x30] sm:$0xff]  ;;  %s280_s25 = scalar_lea.vmem %s683_s7, %s513_s10 }
   0xe   : > { %320 = vmatpush.msra.mxu0 %v286_v1  ;;  %v282_v3 = vld [vmem:[%s274_s13] sm:$0xff]  ;;  %v283_v4 = vld [vmem:[%s274_s13 + $0x8] sm:$0xff]  ;;  %v284_v5 = vld [vmem:[%s274_s13 + $0x10] sm:$0xff]  ;;  %372 = vmatpush.msra.mxu1 %v340_v7 }
   0xf   : > { %516 = vmatmul.msk.f32.vlgmr.msra.gmra.mxu0 %vm292_vm0, %v282_v3  ;;  %v285_v6 = vld [vmem:[%s274_s13 + $0x18] sm:$0xff]  ;;  %425 = vmatpush.msra.mxu2 %v399_v11  ;;  %v397_v13 = vld [vmem:[%s681_s5 + $0x28] sm:$0xff]  ;;  %v396_v16 = vld [vmem:[%s681_s5 + $0x20] sm:$0xff] }
  0x10   : > { %373 = vmatpush.msra.mxu1 %v339_v8  ;;  %530 = vmatpush.msra.mxu3 %v399_v11  ;;  %v395_v18 = vld [vmem:[%s681_s5 + $0x18] sm:$0xff]  ;;  %v394_v28 = vld [vmem:[%s681_s5 + $0x10] sm:$0xff]  ;;  %v393_v29 = vld [vmem:[%s681_s5 + $0x8] sm:$0xff] }
  0x11   : > { %426 = vmatpush.msra.mxu2 %v398_v12  ;;  %v392_v30 = vld [vmem:[%s681_s5] sm:$0xff] }
  0x12   : > { %374 = vmatpush.msra.mxu1 %v338_v9  ;;  %531 = vmatpush.msra.mxu3 %v398_v12  ;;  %v547_v31 = vld [vmem:[%s680_s4] ss:$0 sm:$0xff] }
  0x13   : > { %427 = vmatpush.msra.mxu2 %v397_v13  ;;  %v548_v44 = vld [vmem:[%s682_s6] ss:$0 sm:$0xff] }
  0x14   : > { %532 = vmatpush.msra.mxu3 %v397_v13 }
  0x15   : > { %428 = vmatpush.msra.mxu2 %v396_v16 }
  0x16   : > { %533 = vmatpush.msra.mxu3 %v396_v16 }
  0x17   : > { %517 = vmatmul.msk.f32.gmra.mxu0 %vm292_vm0, %v283_v4  ;;  %429 = vmatpush.msra.mxu2 %v395_v18 }
  0x18   : > { %534 = vmatpush.msra.mxu3 %v395_v18 }
  0x19   : > { %430 = vmatpush.msra.mxu2 %v394_v28 }
  0x1a   : > { %535 = vmatpush.msra.mxu3 %v394_v28 }
  0x1b   : > { %431 = vmatpush.msra.mxu2 %v393_v29 }
  0x1c   : > { %536 = vmatpush.msra.mxu3 %v393_v29 }
  0x1d   : > { %432 = vmatpush.msra.mxu2 %v392_v30 }
  0x1e   : > { %537 = vmatpush.msra.mxu3 %v392_v30 }
  0x1f   : > { %518 = vmatmul.msk.f32.gmra.mxu0 %vm292_vm0, %v284_v5 }
  0x27   : > { %519 = vmatmul.msk.f32.gmra.mxu0 %vm292_vm0, %v285_v6 }
  0x8c   : > { %v322_v14 = vpop.f32.mrf.mxu0 }
  0x8d   : > { %v323_v15 = vadd.f32 %v546_v10, %v322_v14 }
  0x8f   : > { %v334_v17 = vmax.f32 %v323_v15, 0.0 }
  0x91   : > { %520 = vmatmul.msk.f32.vlgmr.msra.gmra.mxu1 %vm346_vm1, %v334_v17 }
  0x94   : > { %v325_v19 = vpop.f32.mrf.mxu0 }
  0x95   : > { %v326_v20 = vadd.f32 %v546_v10, %v325_v19 }
  0x97   : > { %v335_v21 = vmax.f32 %v326_v20, 0.0 }
  0x99   : > { %521 = vmatmul.msk.f32.gmra.mxu1 %vm346_vm1, %v335_v21 }
  0x9c   : > { %v328_v22 = vpop.f32.mrf.mxu0 }
  0x9d   : > { %v329_v23 = vadd.f32 %v546_v10, %v328_v22 }
  0x9f   : > { %v336_v24 = vmax.f32 %v329_v23, 0.0 }
  0xa1   : > { %522 = vmatmul.msk.f32.gmra.mxu1 %vm346_vm1, %v336_v24 }
  0xa4   : > { %v331_v25 = vpop.f32.mrf.mxu0 }
  0xa5   : > { %v332_v26 = vadd.f32 %v546_v10, %v331_v25 }
  0xa7   : > { %v337_v27 = vmax.f32 %v332_v26, 0.0 }
  0xa9   : > { %523 = vmatmul.msk.f32.gmra.mxu1 %vm346_vm1, %v337_v27 }
 0x10e   : > { %v376_v32 = vpop.f32.mrf.mxu1 }
 0x10f   : > { %v377_v33 = vadd.f32 %v547_v31, %v376_v32 }
 0x111   : > { %v388_v34 = vmax.f32 %v377_v33, 0.0 }
 0x113   : > { %524 = vmatmul.msk.f32.vlgmr.msra.gmra.mxu2 %vm404_vm2, %v388_v34 }
 0x116   : > { %v379_v35 = vpop.f32.mrf.mxu1 }
 0x117   : > { %v380_v36 = vadd.f32 %v547_v31, %v379_v35 }
 0x119   : > { %v389_v37 = vmax.f32 %v380_v36, 0.0 }
 0x11b   : > { %525 = vmatmul.msk.f32.vlgmr.msra.gmra.mxu3 %vm404_vm2, %v389_v37 }
 0x11e   : > { %v382_v38 = vpop.f32.mrf.mxu1 }
 0x11f   : > { %v383_v39 = vadd.f32 %v547_v31, %v382_v38 }
 0x121   : > { %v390_v40 = vmax.f32 %v383_v39, 0.0 }
 0x123   : > { %526 = vmatmul.msk.f32.gmra.mxu3 %vm404_vm2, %v390_v40 }
 0x126   : > { %v385_v41 = vpop.f32.mrf.mxu1 }
 0x127   : > { %v386_v42 = vadd.f32 %v547_v31, %v385_v41 }
 0x129   : > { %v391_v43 = vmax.f32 %v386_v42, 0.0 }
 0x12b   : > { %527 = vmatmul.msk.f32.gmra.mxu3 %vm404_vm2, %v391_v43 }
 0x196   : > { %v434_v45 = vpop.f32.mrf.mxu2 }
 0x197   : > { %v435_v46 = vadd.f32 %v548_v44, %v434_v45 }
 0x199   : > { %447 = vst.msk [vmem:[%s280_s25] sm:$0xff] %vm446_vm3, %v435_v46 }
 0x19e   : > { %v437_v47 = vpop.f32.mrf.mxu3 }
 0x19f   : > { %v438_v48 = vadd.f32 %v548_v44, %v437_v47 }
 0x1a1   : > { %448 = vst.msk [vmem:[%s280_s25 + $0x8] sm:$0xff] %vm446_vm3, %v438_v48 }
 0x1a6   : > { %v440_v49 = vpop.f32.mrf.mxu3 }
 0x1a7   : > { %v441_v50 = vadd.f32 %v548_v44, %v440_v49 }
 0x1a9   : > { %449 = vst.msk [vmem:[%s280_s25 + $0x10] sm:$0xff] %vm446_vm3, %v441_v50 }
 0x1ae   : > { %v443_v51 = vpop.f32.mrf.mxu3 }
 0x1af   : > { %v444_v52 = vadd.f32 %v548_v44, %v443_v51 }
 0x1b1   : > { %450 = vst.msk [vmem:[%s280_s25 + $0x18] sm:$0xff] %vm446_vm3, %v444_v52 }
 0x1b2 PF: > { %s17_s24 = sadd.s32 1, %s555_s24  }
 0x1b3   : > { %p14_p4 = scmp.ge.s32.totalorder %s17_s24, 4  }
 0x1b5   :  { %16 = sbr.rel (!%p14_p4) target bundleno = 1 (0x1), region = 78 }

</bundles_post_ra>
